<compile_context>
chip_gen: v7x
topology: tpu7x:2x2x1
jax: 0.10.0
libtpu: 0.0.40
codegen_flags: <defaults>
</compile_context>

<pallas_src>
import math

import jax
import jax.numpy as jnp
from jax.experimental import pallas as pl
from jax.experimental.pallas import tpu as pltpu


def _round_up(n, m):
    return ((n + m - 1) // m) * m


def _cdiv(a, b):
    return (a + b - 1) // b


def _make_priornet_kernel(n_layers):
    """Builds kernel(x_ref, z_ref, E_ref, S_ref, w0, b0, ..., w{L-1}, b{L-1}, o_ref)."""

    def kernel(x_ref, z_ref, e_ref, s_ref, *rest):
        wb_refs = rest[:-1]
        o_ref = rest[-1]

        h = x_ref[...]                                      # [TB, D_in] (f32 or bf16)
        for l in range(n_layers):
            w = wb_refs[2 * l][...]                         # fused (concat / block-diag) weights
            b = wb_refs[2 * l + 1][...]                     # [1, Z*d_l] f32
            # MXU op in the storage dtype, f32 accumulation; bias/ReLU on the VPU in f32.
            h = jnp.dot(h.astype(w.dtype), w, preferred_element_type=jnp.float32) + b
            if l < n_layers - 1:
                h = jnp.maximum(h, 0.0)                     # ReLU between hidden layers only

        # z-weighted ensemble combine: one expander matmul + one full-width vmul + one selector matmul.
        z_exp = jnp.dot(z_ref[...], e_ref[...], preferred_element_type=jnp.float32)   # [TB, Z*K]
        out = jnp.dot(h * z_exp, s_ref[...], preferred_element_type=jnp.float32)       # [TB, K]
        o_ref[...] = out.astype(o_ref.dtype)

    return kernel


def fuse_priornet_params(weights, biases):
    """Fuse the ensemble (z_dim) axis into the lane axis.

    weights[l]: [Z, d_in_l, d_out_l]  ->  layer 0: [D_in, Z*d0] (concat along output lanes)
                                          layer l>0: block-diagonal [Z*d_{l-1}, Z*d_l]
    biases[l]:  [Z, 1, d_out_l]       ->  [1, Z*d_l]
    """
    Z = weights[0].shape[0]
    fused_w, fused_b = [], []
    for l, (w, b) in enumerate(zip(weights, biases)):
        _, d_in, d_out = w.shape
        if l == 0:
            wf = jnp.transpose(w, (1, 0, 2)).reshape(d_in, Z * d_out)
        else:
            wf = jnp.zeros((Z * d_in, Z * d_out), w.dtype)
            for e in range(Z):
                wf = wf.at[e * d_in:(e + 1) * d_in, e * d_out:(e + 1) * d_out].set(w[e])
        fused_w.append(wf)
        fused_b.append(b.reshape(1, Z * d_out))
    return fused_w, fused_b


def priornet_forward(x, z, fused_weights, fused_biases, *, mxu_dtype=jnp.float32, tb=None):
    """
    x:             [B, input_dim]
    z:             [B, z_dim]
    fused_weights: list of fused (ensemble-in-lanes) weight matrices (see fuse_priornet_params)
    fused_biases:  list of [1, Z*d_l]
    mxu_dtype:     dtype fed to the MXU / streamed from HBM for x and weights
                   (jnp.bfloat16 recommended on v6e/v7x; f32 default is safe everywhere)
    returns:       [B, output_dim] f32
    """
    B, D = x.shape
    Z = z.shape[1]
    n_layers = len(fused_weights)
    ZK = fused_weights[-1].shape[-1]
    K = ZK // Z

    # Static 0/1 expander / selector for the z-weighted combine (tiny, resident in VMEM).
    E = jnp.repeat(jnp.eye(Z, dtype=jnp.float32), K, axis=1)   # [Z, Z*K], E[e, e*K+k] = 1
    S = jnp.tile(jnp.eye(K, dtype=jnp.float32), (Z, 1))        # [Z*K, K], S[e*K+k, k] = 1

    x = x.astype(mxu_dtype)
    z = z.astype(jnp.float32)
    ws = [w.astype(mxu_dtype) for w in fused_weights]
    bs = [b.astype(jnp.float32) for b in fused_biases]

    if tb is None:
        # Complete VMEM budget: resident fused params (double-buffered blocks) + double-buffered
        # streamed x/z/out rows + in-kernel f32 intermediates. Keep <= ~28 MiB so the 32 MiB
        # vmem_limit holds with headroom even on v7x (64 MiB physical VMEM).
        static_bytes = sum(int(a.nbytes) for a in ws + bs) + int(E.nbytes) + int(S.nbytes)
        stream_row = 2 * (D * x.dtype.itemsize + Z * 4 + K * 4)
        inter_row = 4 * (sum(w.shape[-1] for w in ws) + ZK)
        budget = 28 * 1024 * 1024

        tb = max(8, min(2048, _round_up(B, 8)))
        while tb > 8 and 2 * static_bytes + tb * (stream_row + inter_row) > budget:
            tb = _round_up(tb // 2, 8)
        # v7x megacore: "parallel" only shards across the 2 TensorCores with >= 2 grid steps.
        if B > 8 and _cdiv(B, tb) < 2:
            tb = max(8, _round_up(_cdiv(B, 2), 8))

    Bp = _round_up(B, tb)
    if Bp != B:
        # Padded rows carry z = 0, so their outputs are exactly zero and are sliced off below.
        x = jnp.pad(x, ((0, Bp - B), (0, 0)))
        z = jnp.pad(z, ((0, Bp - B), (0, 0)))

    in_specs = [
        pl.BlockSpec((tb, D), lambda i: (i, 0)),     # x streamed per batch tile
        pl.BlockSpec((tb, Z), lambda i: (i, 0)),     # z streamed per batch tile
        pl.BlockSpec(E.shape, lambda i: (0, 0)),     # resident expander
        pl.BlockSpec(S.shape, lambda i: (0, 0)),     # resident selector
    ]
    operands = [x, z, E, S]
    for w, b in zip(ws, bs):
        # Constant index_map -> fused ensemble params loaded once, resident across batch tiles.
        in_specs.append(pl.BlockSpec(w.shape, lambda i: (0, 0)))
        in_specs.append(pl.BlockSpec(b.shape, lambda i: (0, 0)))
        operands.append(w)
        operands.append(b)

    out = pl.pallas_call(
        _make_priornet_kernel(n_layers),
        out_shape=jax.ShapeDtypeStruct((Bp, K), jnp.float32),
        grid_spec=pl.GridSpec(
            grid=(Bp // tb,),
            in_specs=in_specs,
            out_specs=pl.BlockSpec((tb, K), lambda i: (i, 0)),
        ),
        compiler_params=pltpu.CompilerParams(
            dimension_semantics=("parallel",),
            vmem_limit_bytes=32 * 1024 * 1024,
        ),
    )(*operands)

    return out[:B]


def init_priornet_params(key, input_dim, hidden_dims, output_dim, z_dim, bias=True):
    """Xavier-uniform weights per ensemble member (bias filled with 0.01), stacked over z_dim."""
    dims = [input_dim] + list(hidden_dims) + [output_dim]
    weights, biases = [], []
    for l in range(len(dims) - 1):
        d_in, d_out = dims[l], dims[l + 1]
        key, sub = jax.random.split(key)
        bound = math.sqrt(6.0 / (d_in + d_out))          # nn.init.xavier_uniform_
        w = jax.random.uniform(sub, (z_dim, d_in, d_out), jnp.float32, -bound, bound)
        b = jnp.full((z_dim, 1, d_out), 0.01 if bias else 0.0, jnp.float32)
        weights.append(w)
        biases.append(b)
    return weights, biases


def priornet_ref(x, z, weights, biases):
    """Plain-JAX reference (per-member MLPs, then einsum('ijk,ji->jk')), full f32 matmuls."""
    Z = z.shape[1]
    n_layers = len(weights)
    outs = []
    for e in range(Z):
        h = x
        for l in range(n_layers):
            h = jnp.dot(h, weights[l][e], precision=jax.lax.Precision.HIGHEST) + biases[l][e]
            if l < n_layers - 1:
                h = jnp.maximum(h, 0.0)
        outs.append(h)
    outputs = jnp.stack(outs)                            # [Z, B, K]
    return jnp.einsum('ijk,ji->jk', outputs, z)


if __name__ == "__main__":
    key = jax.random.PRNGKey(0)
    k_x, k_z, k_w = jax.random.split(key, 3)

    batch, input_dim, hidden_dims, output_dim, z_dim = 8, 32, [32, 16], 8, 4

    x = jax.random.normal(k_x, (batch, input_dim), jnp.float32)
    z = jax.random.normal(k_z, (batch, z_dim), jnp.float32)
    weights, biases = init_priornet_params(k_w, input_dim, hidden_dims, output_dim,
                                           z_dim, bias=True)
    fused_w, fused_b = fuse_priornet_params(weights, biases)

    ref = priornet_ref(x, z, weights, biases)

    # f32 path (safe default on all generations).
    out = priornet_forward(x, z, fused_w, fused_b)
    jax.block_until_ready(out)
    assert out.shape == (batch, output_dim), out.shape
    # Tolerance covers the MXU's reduced-precision default for f32 operands.
    assert jnp.allclose(out, ref, atol=2e-2, rtol=2e-2), float(jnp.max(jnp.abs(out - ref)))

    # bf16-streaming path (the v6e/v7x perf configuration): verify it runs and stays close.
    out_bf16 = priornet_forward(x, z, fused_w, fused_b, mxu_dtype=jnp.bfloat16)
    jax.block_until_ready(out_bf16)
    assert out_bf16.shape == (batch, output_dim), out_bf16.shape
    assert jnp.allclose(out_bf16, ref, atol=1e-1, rtol=1e-1), float(jnp.max(jnp.abs(out_bf16 - ref)))

    print("KERNEL_OK")
</pallas_src>

<mosaic_0001>
module attributes {stable_mosaic.version = 11 : i64} {
  func.func @kernel(%arg0: i32, %arg1: memref<8x32xf32, #tpu.memory_space<vmem>>, %arg2: memref<8x4xf32, #tpu.memory_space<vmem>>, %arg3: memref<4x32xf32, #tpu.memory_space<vmem>>, %arg4: memref<32x8xf32, #tpu.memory_space<vmem>>, %arg5: memref<32x128xf32, #tpu.memory_space<vmem>>, %arg6: memref<1x128xf32, #tpu.memory_space<vmem>>, %arg7: memref<128x64xf32, #tpu.memory_space<vmem>>, %arg8: memref<1x64xf32, #tpu.memory_space<vmem>>, %arg9: memref<64x32xf32, #tpu.memory_space<vmem>>, %arg10: memref<1x32xf32, #tpu.memory_space<vmem>>, %arg11: memref<8x8xf32, #tpu.memory_space<vmem>>) attributes {dimension_semantics = [#tpu.dimension_semantics<parallel>], iteration_bounds = array<i64: 1>, scalar_prefetch = 0 : i64, scratch_operands = 0 : i64, tpu.core_type = #tpu.core_type<tc>, window_params = [{transform_indices = @transform_0, window_bounds = array<i64: 8, 32>}, {transform_indices = @transform_1, window_bounds = array<i64: 8, 4>}, {pipeline_mode = #tpu.pipeline_mode<synchronous>, transform_indices = @transform_2, window_bounds = array<i64: 4, 32>}, {pipeline_mode = #tpu.pipeline_mode<synchronous>, transform_indices = @transform_3, window_bounds = array<i64: 32, 8>}, {pipeline_mode = #tpu.pipeline_mode<synchronous>, transform_indices = @transform_4, window_bounds = array<i64: 32, 128>}, {pipeline_mode = #tpu.pipeline_mode<synchronous>, transform_indices = @transform_5, window_bounds = array<i64: 1, 128>}, {pipeline_mode = #tpu.pipeline_mode<synchronous>, transform_indices = @transform_6, window_bounds = array<i64: 128, 64>}, {pipeline_mode = #tpu.pipeline_mode<synchronous>, transform_indices = @transform_7, window_bounds = array<i64: 1, 64>}, {pipeline_mode = #tpu.pipeline_mode<synchronous>, transform_indices = @transform_8, window_bounds = array<i64: 64, 32>}, {pipeline_mode = #tpu.pipeline_mode<synchronous>, transform_indices = @transform_9, window_bounds = array<i64: 1, 32>}, {transform_indices = @transform_10, window_bounds = array<i64: 8, 8>}]} {
    %c0 = arith.constant 0 : index
    %c0_0 = arith.constant 0 : index
    %0 = vector.load %arg1[%c0, %c0_0] : memref<8x32xf32, #tpu.memory_space<vmem>>, vector<8x32xf32>
    %c0_1 = arith.constant 0 : index
    %c0_2 = arith.constant 0 : index
    %1 = vector.load %arg5[%c0_1, %c0_2] : memref<32x128xf32, #tpu.memory_space<vmem>>, vector<32x128xf32>
    %c0_3 = arith.constant 0 : index
    %c0_4 = arith.constant 0 : index
    %2 = vector.load %arg6[%c0_3, %c0_4] : memref<1x128xf32, #tpu.memory_space<vmem>>, vector<1x128xf32>
    %cst = arith.constant dense<0.000000e+00> : vector<8x128xf32>
    %3 = tpu.matmul %0, %1, %cst {dimension_numbers = #tpu.dot_dimension_numbers<[1], [0], [0], [1], [0, 0, 1, 1], [], []>} : vector<8x32xf32>, vector<32x128xf32>, vector<8x128xf32> -> vector<8x128xf32>
    %4 = vector.broadcast %2 : vector<1x128xf32> to vector<8x128xf32>
    %5 = arith.addf %3, %4 : vector<8x128xf32>
    %cst_5 = arith.constant 0.000000e+00 : f32
    %6 = vector.broadcast %cst_5 : f32 to vector<8x128xf32>
    %7 = arith.maximumf %5, %6 : vector<8x128xf32>
    %c0_6 = arith.constant 0 : index
    %c0_7 = arith.constant 0 : index
    %8 = vector.load %arg7[%c0_6, %c0_7] : memref<128x64xf32, #tpu.memory_space<vmem>>, vector<128x64xf32>
    %c0_8 = arith.constant 0 : index
    %c0_9 = arith.constant 0 : index
    %9 = vector.load %arg8[%c0_8, %c0_9] : memref<1x64xf32, #tpu.memory_space<vmem>>, vector<1x64xf32>
    %cst_10 = arith.constant dense<0.000000e+00> : vector<8x64xf32>
    %10 = tpu.matmul %7, %8, %cst_10 {dimension_numbers = #tpu.dot_dimension_numbers<[1], [0], [0], [1], [0, 0, 1, 1], [], []>} : vector<8x128xf32>, vector<128x64xf32>, vector<8x64xf32> -> vector<8x64xf32>
    %11 = vector.broadcast %9 : vector<1x64xf32> to vector<8x64xf32>
    %12 = arith.addf %10, %11 : vector<8x64xf32>
    %cst_11 = arith.constant 0.000000e+00 : f32
    %13 = vector.broadcast %cst_11 : f32 to vector<8x64xf32>
    %14 = arith.maximumf %12, %13 : vector<8x64xf32>
    %c0_12 = arith.constant 0 : index
    %c0_13 = arith.constant 0 : index
    %15 = vector.load %arg9[%c0_12, %c0_13] : memref<64x32xf32, #tpu.memory_space<vmem>>, vector<64x32xf32>
    %c0_14 = arith.constant 0 : index
    %c0_15 = arith.constant 0 : index
    %16 = vector.load %arg10[%c0_14, %c0_15] : memref<1x32xf32, #tpu.memory_space<vmem>>, vector<1x32xf32>
    %cst_16 = arith.constant dense<0.000000e+00> : vector<8x32xf32>
    %17 = tpu.matmul %14, %15, %cst_16 {dimension_numbers = #tpu.dot_dimension_numbers<[1], [0], [0], [1], [0, 0, 1, 1], [], []>} : vector<8x64xf32>, vector<64x32xf32>, vector<8x32xf32> -> vector<8x32xf32>
    %18 = vector.broadcast %16 : vector<1x32xf32> to vector<8x32xf32>
    %19 = arith.addf %17, %18 : vector<8x32xf32>
    %c0_17 = arith.constant 0 : index
    %c0_18 = arith.constant 0 : index
    %20 = vector.load %arg2[%c0_17, %c0_18] : memref<8x4xf32, #tpu.memory_space<vmem>>, vector<8x4xf32>
    %c0_19 = arith.constant 0 : index
    %c0_20 = arith.constant 0 : index
    %21 = vector.load %arg3[%c0_19, %c0_20] : memref<4x32xf32, #tpu.memory_space<vmem>>, vector<4x32xf32>
    %cst_21 = arith.constant dense<0.000000e+00> : vector<8x32xf32>
    %22 = tpu.matmul %20, %21, %cst_21 {dimension_numbers = #tpu.dot_dimension_numbers<[1], [0], [0], [1], [0, 0, 1, 1], [], []>} : vector<8x4xf32>, vector<4x32xf32>, vector<8x32xf32> -> vector<8x32xf32>
    %23 = arith.mulf %19, %22 : vector<8x32xf32>
    %c0_22 = arith.constant 0 : index
    %c0_23 = arith.constant 0 : index
    %24 = vector.load %arg4[%c0_22, %c0_23] : memref<32x8xf32, #tpu.memory_space<vmem>>, vector<32x8xf32>
    %cst_24 = arith.constant dense<0.000000e+00> : vector<8x8xf32>
    %25 = tpu.matmul %23, %24, %cst_24 {dimension_numbers = #tpu.dot_dimension_numbers<[1], [0], [0], [1], [0, 0, 1, 1], [], []>} : vector<8x32xf32>, vector<32x8xf32>, vector<8x8xf32> -> vector<8x8xf32>
    %c0_25 = arith.constant 0 : index
    %c0_26 = arith.constant 0 : index
    %26 = vector.load %arg11[%c0_25, %c0_26] : memref<8x8xf32, #tpu.memory_space<vmem>>, vector<8x8xf32>
    tpu.vector_store %arg11[%c0_25, %c0_26], %25 {strides = array<i32>} : memref<8x8xf32, #tpu.memory_space<vmem>>, vector<8x8xf32>,
    return
  }
  func.func @transform_0(%arg0: i32) -> (i32, i32) {
    %c0_i32 = arith.constant 0 : i32
    %c0_i32_0 = arith.constant 0 : i32
    return %arg0, %c0_i32 : i32, i32
  }
  func.func @transform_1(%arg0: i32) -> (i32, i32) {
    %c0_i32 = arith.constant 0 : i32
    %c0_i32_0 = arith.constant 0 : i32
    return %arg0, %c0_i32 : i32, i32
  }
  func.func @transform_2(%arg0: i32) -> (i32, i32) {
    %c0_i32 = arith.constant 0 : i32
    %c0_i32_0 = arith.constant 0 : i32
    %c0_i32_1 = arith.constant 0 : i32
    return %c0_i32, %c0_i32_0 : i32, i32
  }
  func.func @transform_3(%arg0: i32) -> (i32, i32) {
    %c0_i32 = arith.constant 0 : i32
    %c0_i32_0 = arith.constant 0 : i32
    %c0_i32_1 = arith.constant 0 : i32
    return %c0_i32, %c0_i32_0 : i32, i32
  }
  func.func @transform_4(%arg0: i32) -> (i32, i32) {
    %c0_i32 = arith.constant 0 : i32
    %c0_i32_0 = arith.constant 0 : i32
    %c0_i32_1 = arith.constant 0 : i32
    return %c0_i32, %c0_i32_0 : i32, i32
  }
  func.func @transform_5(%arg0: i32) -> (i32, i32) {
    %c0_i32 = arith.constant 0 : i32
    %c0_i32_0 = arith.constant 0 : i32
    %c0_i32_1 = arith.constant 0 : i32
    return %c0_i32, %c0_i32_0 : i32, i32
  }
  func.func @transform_6(%arg0: i32) -> (i32, i32) {
    %c0_i32 = arith.constant 0 : i32
    %c0_i32_0 = arith.constant 0 : i32
    %c0_i32_1 = arith.constant 0 : i32
    return %c0_i32, %c0_i32_0 : i32, i32
  }
  func.func @transform_7(%arg0: i32) -> (i32, i32) {
    %c0_i32 = arith.constant 0 : i32
    %c0_i32_0 = arith.constant 0 : i32
    %c0_i32_1 = arith.constant 0 : i32
    return %c0_i32, %c0_i32_0 : i32, i32
  }
  func.func @transform_8(%arg0: i32) -> (i32, i32) {
    %c0_i32 = arith.constant 0 : i32
    %c0_i32_0 = arith.constant 0 : i32
    %c0_i32_1 = arith.constant 0 : i32
    return %c0_i32, %c0_i32_0 : i32, i32
  }
  func.func @transform_9(%arg0: i32) -> (i32, i32) {
    %c0_i32 = arith.constant 0 : i32
    %c0_i32_0 = arith.constant 0 : i32
    %c0_i32_1 = arith.constant 0 : i32
    return %c0_i32, %c0_i32_0 : i32, i32
  }
  func.func @transform_10(%arg0: i32) -> (i32, i32) {
    %c0_i32 = arith.constant 0 : i32
    %c0_i32_0 = arith.constant 0 : i32
    return %arg0, %c0_i32 : i32, i32
  }
}

</mosaic_0001>

<bundles_post_ra>
// kernel: tpu_custom_call.1
= control target key start
LH: loop header
LB: loop body
LE: loop exit
PB: predicated region body
PF: predicated region fallthrough
CT: control target
= control target key end

     0   :  { %v683_v3 = vmov 0.0|0.0   ;;  %vm684_vm0 = vmmov 0   ;;  %v685_v6 = vmov 0.0   ;;  %s897_s0 = inlined_call_operand.vmem [shape: f32[8,32], index: 0, kind: input, shape index: {}]   ;;  %s898_s1 = inlined_call_operand.vmem [shape: f32[8,4], index: 1, kind: input, shape index: {}]   ;;  %s899_s2 = inlined_call_operand.vmem [shape: f32[4,32], index: 2, kind: input, shape index: {}]   ;;  %s900_s3 = inlined_call_operand.vmem [shape: f32[32,8], index: 3, kind: input, shape index: {}]   ;;  %s901_s4 = inlined_call_operand.vmem [shape: f32[32,128], index: 4, kind: input, shape index: {}]   ;;  %s902_s5 = inlined_call_operand.vmem [shape: f32[1,128], index: 5, kind: input, shape index: {}]   ;;  %s903_s6 = inlined_call_operand.vmem [shape: f32[128,64], index: 6, kind: input, shape index: {}]   ;;  %s904_s7 = inlined_call_operand.vmem [shape: f32[1,64], index: 7, kind: input, shape index: {}]   ;;  %s905_s8 = inlined_call_operand.vmem [shape: f32[64,32], index: 8, kind: input, shape index: {}]   ;;  %s906_s9 = inlined_call_operand.vmem [shape: f32[1,32], index: 9, kind: input, shape index: {}]   ;;  %s907_s10 = inlined_call_operand.hbm [shape: f32[8,8], index: 10, kind: output, shape index: {}]  }
   0x1   :  { %v37_v0 = vld [vmem:[%s901_s4] sm:$0xff]  ;;  %v38_v1 = vld [vmem:[%s901_s4 + $0x8] sm:$0xff]  ;;  %v39_v2 = vld [vmem:[%s901_s4 + $0x10] sm:$0xff]  ;;  %607 = vmatprep.subr.bf16.mxu0 %v683_v3  ;;  %534 = vmatprep.mubr.msk.f32.mxu0 %vm684_vm0, %v685_v6 }
   0x2   :  { %v608_v4 = vpack.c.bf16 %v38_v1, %v37_v0  ;;  %v40_v5 = vld [vmem:[%s901_s4 + $0x18] sm:$0xff]  ;;  %v123_v7 = vld [vmem:[%s903_s6] sm:$0xff]  ;;  %613 = vmatprep.subr.bf16.mxu1 %v683_v3  ;;  %v124_v8 = vld [vmem:[%s903_s6 + $0x8] sm:$0xff]  ;;  %569 = vmatprep.mubr.msk.f32.mxu1 %vm684_vm0, %v685_v6 }
   0x3   :  { %v125_v9 = vld [vmem:[%s903_s6 + $0x10] sm:$0xff]  ;;  %v126_v10 = vld [vmem:[%s903_s6 + $0x18] sm:$0xff]  ;;  %v611_v11 = vpack.c.bf16 %v40_v5, %v39_v2  ;;  %v614_v12 = vpack.c.bf16 %v124_v8, %v123_v7  ;;  %v127_v14 = vld [vmem:[%s903_s6 + $0x20] sm:$0xff] }
   0x4   :  { %609 = vmatpush3.bf16.msra.mxu0 %v608_v4  ;;  %v617_v13 = vpack.c.bf16 %v126_v10, %v125_v9  ;;  %v128_v15 = vld [vmem:[%s903_s6 + $0x28] sm:$0xff] }
   0x5   :  { %610 = vmatprep.subr.bf16.mxu0 %v683_v3  ;;  %615 = vmatpush3.bf16.msra.mxu1 %v614_v12 }
   0x6   :  { %616 = vmatprep.subr.bf16.mxu1 %v683_v3 }
   0x7   :  { %15 = vsyncpa [#allocation3], 0  ;;  %v36_v16 = vld [vmem:[%s897_s0] sm:$0xff]  ;;  %vm48_vm1 = vcmask 261120   ;;  %v620_v17 = vpack.c.bf16 %v128_v15, %v127_v14  ;;  %v129_v18 = vld [vmem:[%s903_s6 + $0x30] sm:$0xff]  ;;  %vm232_vm2 = vcmask 523264  }
   0x8   :  { %612 = vmatpush3.bf16.msra.mxu0 %v611_v11  ;;  %v130_v19 = vld [vmem:[%s903_s6 + $0x38] sm:$0xff]  ;;  %v131_v21 = vld [vmem:[%s903_s6 + $0x40] sm:$0xff]  ;;  %v132_v22 = vld [vmem:[%s903_s6 + $0x48] sm:$0xff]  ;;  %vm312_vm3 = vcmask 1043456   ;;  %vm308_vm4 = vcmask 31744   ;;  %s686_s0 = smov [#allocation2]  }
   0x9   :  { %637 = vmatprep.subr.bf16.mxu0 %v683_v3  ;;  %618 = vmatpush3.bf16.msra.mxu1 %v617_v13  ;;  %v623_v20 = vpack.c.bf16 %v130_v19, %v129_v18  ;;  %v626_v23 = vpack.c.bf16 %v132_v22, %v131_v21  ;;  %v133_v24 = vld [vmem:[%s903_s6 + $0x50] sm:$0xff]  ;;  %v134_v25 = vld [vmem:[%s903_s6 + $0x58] sm:$0xff]  ;;  %v135_v27 = vld [vmem:[%s903_s6 + $0x60] sm:$0xff]  ;;  %s472_s18 = sshll.u32 %s686_s0, 4  ;;  %vm464_vm5 = vcmask 64512   ;;  %s473_s18 = int_to_ptr.vmem [resolvable:$true] %s472_s18 }
   0xa   :  { %619 = vmatprep.subr.bf16.mxu1 %v683_v3  ;;  %v629_v26 = vpack.c.bf16 %v134_v25, %v133_v24  ;;  %v136_v28 = vld [vmem:[%s903_s6 + $0x68] sm:$0xff]  ;;  %v137_v30 = vld [vmem:[%s903_s6 + $0x70] sm:$0xff]  ;;  %v138_v31 = vld [vmem:[%s903_s6 + $0x78] sm:$0xff]  ;;  %p664_p1 = scmp.lt.s32.totalorder %s473_s18, %s473_s18 }
   0xb   :  { %535 = vmatmul.mubr.msk.f32.vlgmr.msra.gmra.mrb[0].mxu0 %vm48_vm1, %v36_v16  ;;  %v632_v29 = vpack.c.bf16 %v136_v28, %v135_v27  ;;  %v635_v32 = vpack.c.bf16 %v138_v31, %v137_v30  ;;  %v217_v33 = vld [vmem:[%s905_s8] sm:$0xff]  ;;  %v218_v34 = vld [vmem:[%s905_s8 + $0x8] sm:$0xff]  ;;  %v219_v35 = vld [vmem:[%s905_s8 + $0x10] sm:$0xff] }
   0xc   :  { %588 = vmatprep.mubr.msk.f32.mxu0 %vm684_vm0, %v685_v6  ;;  %v638_v36 = vpack.c.bf16 %v218_v34, %v217_v33  ;;  %v220_v37 = vld [vmem:[%s905_s8 + $0x18] sm:$0xff]  ;;  %v221_v39 = vld [vmem:[%s905_s8 + $0x20] sm:$0xff]  ;;  %v222_v40 = vld [vmem:[%s905_s8 + $0x28] sm:$0xff] }
   0xd   :  { %621 = vmatpush3.bf16.msra.mxu1 %v620_v17  ;;  %v641_v38 = vpack.c.bf16 %v220_v37, %v219_v35  ;;  %v644_v41 = vpack.c.bf16 %v222_v40, %v221_v39  ;;  %v480_v42 = vld [vmem:[%s902_s5] ss:$0 sm:$0xff]  ;;  %v223_v47 = vld [vmem:[%s905_s8 + $0x30] sm:$0xff]  ;;  %v224_v48 = vld [vmem:[%s905_s8 + $0x38] sm:$0xff] }
   0xe   :  { %622 = vmatprep.subr.bf16.mxu1 %v683_v3  ;;  %639 = vmatpush3.bf16.msra.mxu0 %v638_v36  ;;  %v647_v49 = vpack.c.bf16 %v224_v48, %v223_v47  ;;  %v482_v50 = vld [vmem:[%s904_s7] ss:$0 sm:$0xff]  ;;  %v388_v58 = vld [vmem:[%s900_s3 + $0x8] sm:$0xff]  ;;  %v389_v60 = vld [vmem:[%s900_s3 + $0x10] sm:$0xff] }
   0xf   :  { %640 = vmatprep.subr.bf16.mxu0 %v683_v3  ;;  %v307_v55 = vld [vmem:[%s899_s2] sm:$0xf]  ;;  %v390_v61 = vld [vmem:[%s900_s3 + $0x18] sm:$0xff] }
  0x10   :  { %v306_v56 = vld [vmem:[%s898_s1] sm:$0xff]  ;;  %v653_v62 = vpack.c.bf16 %v390_v61, %v389_v60 }
  0x11   :  { %624 = vmatpush3.bf16.msra.mxu1 %v623_v20  ;;  %v387_v57 = vld [vmem:[%s900_s3] sm:$0xff]  ;;  %s659_s3 = scalar_lea.vmem %s473_s18, 128 }
  0x12   :  { %625 = vmatprep.subr.bf16.mxu1 %v683_v3  ;;  %642 = vmatpush3.bf16.msra.mxu0 %v641_v38  ;;  %v650_v59 = vpack.c.bf16 %v388_v58, %v387_v57  ;;  %v483_v63 = vld [vmem:[%s906_s9] ss:$0 sm:$0xff]  ;;  %p660_p0 = scmp.ne.s32.totalorder %s473_s18, %s659_s3  ;;  %p665_p2 = scmp.lt.s32.totalorder %s659_s3, %s659_s3 }
  0x13   :  { %643 = vmatprep.subr.bf16.mxu0 %v683_v3 }
  0x14   :  { %p666_p3 = por %p665_p2, %p664_p1 }
  0x15   :  { %627 = vmatpush3.bf16.msra.mxu1 %v626_v23 }
  0x16   :  { %628 = vmatprep.subr.bf16.mxu1 %v683_v3  ;;  %645 = vmatpush3.bf16.msra.mxu0 %v644_v41  ;;  %p667_p4 = pnand %p666_p3, %p660_p0 }
  0x17   :  { %646 = vmatprep.subr.bf16.mxu0 %v683_v3 }
  0x19   :  { %630 = vmatpush3.bf16.msra.mxu1 %v629_v26 }
  0x1a   :  { %631 = vmatprep.subr.bf16.mxu1 %v683_v3  ;;  %648 = vmatpush3.bf16.msra.mxu0 %v647_v49 }
  0x1b   :  { %591 = vmatprep.subr.mxu0 %v685_v6 }
  0x1d   :  { %633 = vmatpush3.bf16.msra.mxu1 %v632_v29 }
  0x1e   :  { %634 = vmatprep.subr.bf16.mxu1 %v683_v3 }
  0x21   :  { %636 = vmatpush3.bf16.msra.mxu1 %v635_v32 }
  0xde   :  { %v118_v43 = vpop.f32.mrb[0].mxu0 }
  0xdf   :  { %v119_v44 = vadd.f32 %v480_v42, %v118_v43  ;;  %v536_v45 = vpop.f32.mrb[1].mxu0 }
  0xe1   :  { %v122_v46 = vmax.f32 %v119_v44, 0.0 }
  0xe3   :  { %570 = vmatmul.mubr.f32.vlgmr.msra.gmra.mrb[0].mxu1 %v122_v46 }
 0x1b6   :  { %v212_v51 = vpop.f32.mrb[0].mxu1 }
 0x1b7   :  { %v213_v52 = vadd.f32 %v482_v50, %v212_v51  ;;  %v571_v53 = vpop.f32.mrb[1].mxu1 }
 0x1b9   :  { %v216_v54 = vmax.f32 %v213_v52, 0.0 }
 0x1bb   :  { %589 = vmatmul.mubr.msk.f32.vlgmr.msra.gmra.mrb[2].mxu0 %vm232_vm2, %v216_v54 }
 0x1bc   :  { %592 = vmatpush3.msk.msra.mxu0 %vm312_vm3, %v307_v55  ;;  %593 = vmatprep.mubr.msk.f32.mxu0 %vm684_vm0, %v685_v6 }
 0x1bd   :  { %649 = vmatprep.subr.bf16.mxu0 %v683_v3 }
 0x1bf   :  { %594 = vmatmul.mubr.msk.f32.vlgmr.msra.gmra.mrb[4].mxu0 %vm308_vm4, %v306_v56 }
 0x1c0   :  { %604 = vmatprep.mubr.msk.f32.mxu0 %vm684_vm0, %v685_v6  ;;  %651 = vmatpush3.bf16.msra.mxu0 %v650_v59 }
 0x1c1   :  { %652 = vmatprep.subr.bf16.mxu0 %v683_v3 }
 0x1c4   :  { %654 = vmatpush3.bf16.msra.mxu0 %v653_v62 }
 0x28e   :  { %v302_v0 = vpop.f32.mrb[2].mxu0 }
 0x28f   :  { %v590_v1 = vpop.f32.mrb[3].mxu0  ;;  %v303_v2 = vadd.f32 %v483_v63, %v302_v0 }
 0x292   :  { %v382_v4 = vpop.f32.mrb[4].mxu0 }
 0x293   :  { %v386_v5 = vmul.f32 %v382_v4, %v303_v2  ;;  %v595_v3 = vpop.f32.mrb[5].mxu0 }
 0x295   :  { %605 = vmatmul.mubr.msk.f32.vlgmr.msra.gmra.mrb[6].mxu0 %vm48_vm1, %v386_v5 }
 0x368   :  { %v460_v6 = vpop.f32.mrb[6].mxu0 }
 0x369   :  { %465 = vst.msk [vmem:[#allocation2] sm:$0xff] %vm464_vm5, %v460_v6  ;;  %v606_v7 = vpop.f32.mrb[7].mxu0 }
 0x36a   :  { %670 = shalt.err (!%p667_p4)
}
 0x36b   :  { %s671_s19 = scalar_lea.hbm %s907_s10, 128 }
 0x36c   :  { %p672_p5 = scmp.ne.s32.totalorder %s907_s10, %s671_s19  ;;  %p675_p6 = scmp.lt.u32.totalorder %s671_s19, %s907_s10 }
 0x36e   :  { %p677_p7 = pnand %p675_p6, %p672_p5 }
 0x370   :  { %680 = shalt.err (!%p677_p7)
}
 0x371   :  { %475 = dma.vmem_to_hbm [thread:$0]  %s473_s18, 128, %s907_s10, [#allocation3]  }
 0x372   :  { %681 = dma.done.wait [#allocation3], 128  }
 0x373   :  { %682 = vsyncadd [#allocation3], 4294967168 }
 0x374   :  { %479 = vsyncpa [#allocation3], 1 }

</bundles_post_ra>
